<compile_context>
chip_gen: v7x
topology: tpu7x:2x2x1
jax: 0.10.0
libtpu: 0.0.40
codegen_flags: <defaults>
</compile_context>

<pallas_src>
import numpy as np
import jax
import jax.numpy as jnp
from jax.experimental import pallas as pl
from jax.experimental.pallas import tpu as pltpu

# ---------------- small, ELECTRA-like config ----------------
B, S = 2, 8          # batch, sequence
H = 32               # hidden_size (generator == discriminator)
E = 16               # embedding_size
V = 512              # vocab_size
N_MASK = 4           # masked positions per sequence
P = B * N_MASK       # total masked positions
MASK_TOKEN_ID = 3
GEN_WEIGHT, DISC_WEIGHT = 1.0, 50.0
TEMPERATURE = 1.0
LN_EPS = 1e-5
OUT_LANES = 128      # packed output slab lane width (single unmasked-tile store)

MAX_TP = 256         # generator row-block cap (v7x: keep P/TP >= 2 once P allows)
MAX_TV = 2048        # vocab tile cap (v6e: prefer multiples of 256; v5e: 128 is enough)
MAX_TR = 256         # discriminator row-block cap


def _gelu(x):
    # TODO(synk): PyTorch nn.GELU defaults to exact erf-GELU; tanh approximation used here
    #             because erf lowering is not guaranteed in Mosaic.
    c = np.float32(np.sqrt(2.0 / np.pi))
    return 0.5 * x * (1.0 + jnp.tanh(c * (x + 0.044715 * x * x * x)))


# ================= kernel 1: generator MLM head (vocab-tiled, fused sampling) =================
# packed accumulator lanes: 0=running max, 1=exp-sum, 2=label logit,
#                           3=argmax value, 4=argmax index, 5=gumbel max value, 6=gumbel argmax index
def mlm_head_kernel(h_ref, w1_ref, b1_ref, g_ref, be_ref, embT_ref, gb_ref, ids_ref, gum_ref,
                    out_ref, h_sc, acc_sc):
    j = pl.program_id(1)
    nj = pl.num_programs(1)
    tv = embT_ref.shape[1]
    BIG = jnp.float32(2 ** 30)
    NEG = jnp.float32(-1e30)

    @pl.when(j == 0)
    def _():
        # g_linear: Linear(H->E) + GELU + LayerNorm(E), computed once per row block.
        # NOTE: LN mean/var reduce over only E=16 of 128 lanes; immaterial at this size.
        h = jnp.dot(h_ref[...], w1_ref[...], preferred_element_type=jnp.float32) + b1_ref[...]
        h = _gelu(h)
        mu = jnp.mean(h, axis=-1, keepdims=True)
        var = jnp.mean((h - mu) ** 2, axis=-1, keepdims=True)
        h = (h - mu) * jax.lax.rsqrt(var + LN_EPS) * g_ref[...] + be_ref[...]
        h_sc[...] = h.astype(jnp.bfloat16)                      # cast once; MXU consumes bf16
        lane8 = jax.lax.broadcasted_iota(jnp.int32, acc_sc.shape, 1)
        acc_sc[...] = jnp.where((lane8 == 0) | (lane8 == 3) | (lane8 == 5), NEG, 0.0)

    acc = acc_sc[...]                                           # one packed scratch load
    m_old, l_old, lbl_old = acc[:, 0:1], acc[:, 1:2], acc[:, 2:3]
    amv_old, ami_old = acc[:, 3:4], acc[:, 4:5]
    gmv_old, gmi_old = acc[:, 5:6], acc[:, 6:7]

    # logits for this vocab tile: [TP, TV]  (bf16 x bf16 on the MXU, f32 accumulate)
    logits = jnp.dot(h_sc[...], embT_ref[...], preferred_element_type=jnp.float32) + gb_ref[...]
    lane = jax.lax.broadcasted_iota(jnp.int32, logits.shape, 1)
    gidx = lane + j * tv                                        # global vocab index per lane
    glane = gidx.astype(jnp.float32)

    # ---- online log-sum-exp ----
    tmax = jnp.max(logits, axis=-1, keepdims=True)
    m_new = jnp.maximum(m_old, tmax)
    l_new = l_old * jnp.exp(m_old - m_new) + jnp.sum(jnp.exp(logits - m_new), axis=-1, keepdims=True)

    # ---- label logit (exactly one vocab tile contributes per row) ----
    onehot = (gidx == ids_ref[...]).astype(jnp.float32)
    lbl_new = lbl_old + jnp.sum(logits * onehot, axis=-1, keepdims=True)

    # ---- running argmax (torch tie-break: first/lowest index) ----
    tidx = jnp.min(jnp.where(logits == tmax, glane, BIG), axis=-1, keepdims=True)
    better = tmax > amv_old
    ami_new = jnp.where(better, tidx, ami_old)
    amv_new = jnp.maximum(amv_old, tmax)

    # ---- gumbel-argmax sampling of fake token ids (noise streamed in; 1/T folded at trace time) ----
    scaled = logits if TEMPERATURE == 1.0 else logits * np.float32(1.0 / TEMPERATURE)
    gscore = scaled + gum_ref[...]
    gtmax = jnp.max(gscore, axis=-1, keepdims=True)
    gtidx = jnp.min(jnp.where(gscore == gtmax, glane, BIG), axis=-1, keepdims=True)
    gbetter = gtmax > gmv_old
    gmi_new = jnp.where(gbetter, gtidx, gmi_old)
    gmv_new = jnp.maximum(gmv_old, gtmax)

    lane8 = jax.lax.broadcasted_iota(jnp.int32, acc_sc.shape, 1)
    packed = jnp.where(lane8 == 0, m_new, 0.0)
    packed = packed + jnp.where(lane8 == 1, l_new, 0.0)
    packed = packed + jnp.where(lane8 == 2, lbl_new, 0.0)
    packed = packed + jnp.where(lane8 == 3, amv_new, 0.0)
    packed = packed + jnp.where(lane8 == 4, ami_new, 0.0)
    packed = packed + jnp.where(lane8 == 5, gmv_new, 0.0)
    packed = packed + jnp.where(lane8 == 6, gmi_new, 0.0)
    acc_sc[...] = packed                                        # one packed scratch store

    # ---- finalize: single lane-dense slab write (uses the freshly computed values) ----
    @pl.when(j == nj - 1)
    def _():
        lse = m_new + jnp.log(l_new)
        perex = lse - lbl_new                                   # -log_softmax[label]
        lane_k = jax.lax.broadcasted_iota(jnp.int32, out_ref.shape, 1)
        slab = jnp.where(lane_k == 0, perex, 0.0)
        slab = slab + jnp.where(lane_k == 1, ami_new, 0.0)
        slab = slab + jnp.where(lane_k == 2, gmi_new, 0.0)
        out_ref[...] = slab


def mlm_head(rel_hidden, w1, b1, gamma, beta, emb_t_bf16, g_bias, ids, gumbel):
    Pn, Hn = rel_hidden.shape
    En, Vn = emb_t_bf16.shape
    assert Vn < (1 << 24)         # argmax / sampled ids round-trip exactly through f32 lanes
    TP = min(Pn, MAX_TP)          # fill the MXU M dim; amortizes the embT stream P/TP-fold
    TV = Vn if Vn <= MAX_TV else MAX_TV
    assert Pn % TP == 0 and Vn % TV == 0 and (TV == Vn or TV % 128 == 0)
    ri, kj = Pn // TP, Vn // TV

    # VMEM budget (v7x has 64 MiB): double-buffered streamed blocks + f32 temporaries + scratch.
    streamed = 2 * (En * TV * 2 + TV * 4 + TP * TV * 4)          # embT(bf16), g_bias, gumbel noise
    resident = TP * Hn * 4 + Hn * En * 4 + 3 * En * 4 + TP * 4 + 2 * TP * OUT_LANES * 4
    temps = 4 * TP * TV * 4                                      # logits / gumbel-score / selects
    scratch = TP * En * 2 + TP * 8 * 4
    vmem_limit = int(min(64 * 1024 * 1024,
                         max(16 * 1024 * 1024, 2 * (streamed + resident + temps + scratch))))

    cost = pl.CostEstimate(
        flops=2 * Pn * Hn * En + 2 * Pn * En * Vn,
        transcendentals=Pn * Vn,                                 # exp in the online LSE
        bytes_accessed=(4 * Pn * Hn + 4 * Hn * En + 12 * En + 4 * Pn
                        + ri * (2 * En * Vn + 4 * Vn) + 4 * Pn * Vn + 4 * Pn * OUT_LANES),
    )
    slab = pl.pallas_call(
        mlm_head_kernel,
        out_shape=jax.ShapeDtypeStruct((Pn, OUT_LANES), jnp.float32),
        grid=(ri, kj),
        in_specs=[
            pl.BlockSpec((TP, Hn), lambda i, j: (i, 0)),     # rel_hidden
            pl.BlockSpec((Hn, En), lambda i, j: (0, 0)),     # g_linear W1 (resident)
            pl.BlockSpec((1, En), lambda i, j: (0, 0)),      # g_linear b1
            pl.BlockSpec((1, En), lambda i, j: (0, 0)),      # LN gamma
            pl.BlockSpec((1, En), lambda i, j: (0, 0)),      # LN beta
            pl.BlockSpec((En, TV), lambda i, j: (0, j)),     # embT (bf16), streamed over vocab
            pl.BlockSpec((1, TV), lambda i, j: (0, j)),      # g_bias, streamed
            pl.BlockSpec((TP, 1), lambda i, j: (i, 0)),      # masked_lm_ids
            pl.BlockSpec((TP, TV), lambda i, j: (i, j)),     # gumbel noise, streamed
        ],
        out_specs=pl.BlockSpec((TP, OUT_LANES), lambda i, j: (i, 0)),
        scratch_shapes=[
            pltpu.VMEM((TP, En), jnp.bfloat16),              # LayerNorm'd hidden, cast once
            pltpu.VMEM((TP, 8), jnp.float32),                # packed per-row accumulators
        ],
        compiler_params=pltpu.CompilerParams(
            dimension_semantics=("parallel", "arbitrary"),
            vmem_limit_bytes=vmem_limit),
        cost_estimate=cost,
    )(rel_hidden, w1, b1, gamma, beta, emb_t_bf16, g_bias, ids, gumbel)

    perex = slab[:, 0]                                # per-token NLL
    preds = slab[:, 1].astype(jnp.int32)              # argmax over vocab
    sampled = slab[:, 2].astype(jnp.int32)            # gumbel-sampled fake token ids
    loss = jnp.mean(perex)                            # F.nll_loss(reduction='mean')
    return perex, loss, preds, sampled


# ================= kernel 2: discriminator head (row-tiled, packed output) =================
def disc_head_kernel(h_ref, w1_ref, b1_ref, w2_ref, b2_ref, y_ref, m_ref, out_ref):
    # d_linear: Linear(H->H) + GELU + Linear(H->1)
    g = _gelu(jnp.dot(h_ref[...], w1_ref[...], preferred_element_type=jnp.float32) + b1_ref[...])
    x = jnp.sum(g * w2_ref[...], axis=-1, keepdims=True) + b2_ref[...]     # [TR,1]

    y = y_ref[...]          # labels (is_fake), float
    w = m_ref[...]          # input_mask weight, float
    # BCE-with-logits, numerically stable, weighted by mask, reduction='none'
    # TODO(synk): log1p would be marginally more precise; plain log kept for guaranteed lowering.
    losses = w * (jnp.maximum(x, 0.0) - x * y + jnp.log(1.0 + jnp.exp(-jnp.abs(x))))

    lane_k = jax.lax.broadcasted_iota(jnp.int32, out_ref.shape, 1)
    out_ref[...] = jnp.where(lane_k == 0, x, 0.0) + jnp.where(lane_k == 1, losses, 0.0)


def disc_head(hidden, w1, b1, w2, b2, labels, mask_w):
    N, Hn = hidden.shape
    TR = min(N, MAX_TR)      # weights have constant index maps (resident) -> big TR is ~free
    assert N % TR == 0
    cost = pl.CostEstimate(
        flops=2 * N * Hn * Hn + 4 * N * Hn,
        transcendentals=2 * N * Hn + N,
        bytes_accessed=4 * (N * Hn + Hn * Hn + 2 * Hn + 1 + 2 * N + N * OUT_LANES),
    )
    slab = pl.pallas_call(
        disc_head_kernel,
        grid=(N // TR,),
        in_specs=[
            pl.BlockSpec((TR, Hn), lambda i: (i, 0)),    # hidden
            pl.BlockSpec((Hn, Hn), lambda i: (0, 0)),    # d_linear W1
            pl.BlockSpec((1, Hn), lambda i: (0, 0)),     # d_linear b1
            pl.BlockSpec((1, Hn), lambda i: (0, 0)),     # d_linear W2 (H->1)
            # TODO(synk): b2 would ideally live in SMEM; kept as a tiny VMEM block for
            #             interpreter compatibility.
            pl.BlockSpec((1, 1), lambda i: (0, 0)),      # d_linear b2
            pl.BlockSpec((TR, 1), lambda i: (i, 0)),     # labels (is_fake)
            pl.BlockSpec((TR, 1), lambda i: (i, 0)),     # input_mask weight
        ],
        out_specs=pl.BlockSpec((TR, OUT_LANES), lambda i: (i, 0)),
        out_shape=jax.ShapeDtypeStruct((N, OUT_LANES), jnp.float32),
        compiler_params=pltpu.CompilerParams(
            dimension_semantics=("parallel",),
            vmem_limit_bytes=32 * 1024 * 1024),
        cost_estimate=cost,
    )(hidden, w1, b1, w2, b2, labels, mask_w)

    logits = slab[:, 0:1]
    losses = slab[:, 1:2]
    # probs / preds are elementwise on [N,1]: free in the XLA epilogue (per perf feedback),
    # and exact sigmoid instead of an in-kernel approximate reciprocal.
    probs = jax.nn.sigmoid(logits)
    preds = (logits > 0.0).astype(jnp.int32)
    return logits, losses, probs, preds


# ================= plain-JAX glue =================
def fake_electra_last_hidden(input_ids, emb_table, proj):
    # TODO(synk): ElectraModel.from_pretrained transformer stacks cannot be loaded here;
    #             stand-in encoder = (tied) embedding lookup + linear projection + tanh.
    h = jnp.take(emb_table, input_ids, axis=0)        # [B, S, E]
    return jnp.tanh(h @ proj)                         # [B, S, H]


if __name__ == "__main__":
    key = jax.random.PRNGKey(0)
    (k_emb, k_gproj, k_dproj, k_gw1, k_dw1, k_dw2, k_ids, k_gum) = jax.random.split(key, 8)

    # ---- deterministic parameters ----
    emb_table = jax.random.normal(k_emb, (V, E), jnp.float32) * 0.02   # tied word embeddings (f32 master)
    # persistent pre-transposed bf16 copy of the tied embedding, built ONCE (not per forward)
    emb_t_bf16 = emb_table.T.astype(jnp.bfloat16)
    gen_proj = jax.random.normal(k_gproj, (E, H), jnp.float32) * 0.05
    disc_proj = jax.random.normal(k_dproj, (E, H), jnp.float32) * 0.05

    g_w1 = jax.random.normal(k_gw1, (H, E), jnp.float32) * 0.05        # g_linear Linear(H,E)
    g_b1 = jnp.zeros((1, E), jnp.float32)
    ln_gamma = jnp.ones((1, E), jnp.float32)
    ln_beta = jnp.zeros((1, E), jnp.float32)
    g_bias = jnp.zeros((1, V), jnp.float32)                            # self.g_bias

    d_w1 = jax.random.normal(k_dw1, (H, H), jnp.float32) * 0.05        # d_linear Linear(H,H)
    d_b1 = jnp.zeros((1, H), jnp.float32)
    d_w2 = jax.random.normal(k_dw2, (1, H), jnp.float32) * 0.05        # d_linear Linear(H,1)
    d_b2 = jnp.zeros((1, 1), jnp.float32)

    # ---- features ----
    input_ids = jax.random.randint(k_ids, (B, S), 4, V)                # avoid special ids 0..3
    input_mask = jnp.ones((B, S), jnp.float32).at[:, -1].set(0.0)      # last token = padding

    # deterministic masking (stand-in for mask(features_to_inputs(...), mask_prob, ...))
    mask_pos = np.zeros((B, S), dtype=bool)
    mask_pos[:, [1, 2, 4, 5]] = True
    flat_pos = np.flatnonzero(mask_pos.reshape(-1))                    # row-major, like torch bool idx

    masked_lm_ids = input_ids.reshape(-1)[flat_pos]                    # [P]
    masked_input_ids = input_ids.reshape(-1).at[flat_pos].set(MASK_TOKEN_ID).reshape(B, S)

    # ---- generator / MLM output (argmax, NLL and gumbel-argmax sampling fused in-kernel) ----
    gen_hidden = fake_electra_last_hidden(masked_input_ids, emb_table, gen_proj)
    rel_hidden = gen_hidden.reshape(B * S, H)[flat_pos]                # [P, H]
    gumbel_noise = jax.random.gumbel(k_gum, (P, V), jnp.float32)       # sample_from_softmax noise
    mlm_perex, mlm_loss, mlm_preds, sampled_token_ids = mlm_head(
        rel_hidden, g_w1, g_b1, ln_gamma, ln_beta, emb_t_bf16, g_bias,
        masked_lm_ids.astype(jnp.int32).reshape(P, 1), gumbel_noise)

    # ---- fake data (scatter sampled ids into the unmasked input_ids) ----
    updated_ids = input_ids.reshape(-1).at[flat_pos].set(
        sampled_token_ids.astype(input_ids.dtype)).reshape(B, S)
    is_fake = (updated_ids != input_ids).astype(jnp.float32)

    # ---- discriminator output ----
    disc_hidden = fake_electra_last_hidden(updated_ids, emb_table, disc_proj)
    d_logits, d_losses, d_probs, d_preds = disc_head(
        disc_hidden.reshape(B * S, H), d_w1, d_b1, d_w2, d_b2,
        is_fake.reshape(B * S, 1), input_mask.reshape(B * S, 1))
    d_loss = d_losses.sum() / jnp.maximum(input_mask.sum(), 1.0)
    per_example_disc = d_losses.reshape(B, S).sum(-1) / jnp.maximum(input_mask.sum(-1), 1.0)

    # ---- total loss ----
    total_loss = GEN_WEIGHT * mlm_loss + DISC_WEIGHT * d_loss

    jax.block_until_ready((total_loss, mlm_perex, mlm_preds, sampled_token_ids,
                           d_logits, d_probs, d_preds, per_example_disc))
    print("KERNEL_OK")
</pallas_src>

<mosaic_0001>
module attributes {stable_mosaic.version = 11 : i64} {
  func.func @mlm_head_kernel(%arg0: i32, %arg1: i32, %arg2: memref<8x32xf32, #tpu.memory_space<vmem>>, %arg3: memref<32x16xf32, #tpu.memory_space<vmem>>, %arg4: memref<1x16xf32, #tpu.memory_space<vmem>>, %arg5: memref<1x16xf32, #tpu.memory_space<vmem>>, %arg6: memref<1x16xf32, #tpu.memory_space<vmem>>, %arg7: memref<16x512xbf16, #tpu.memory_space<vmem>>, %arg8: memref<1x512xf32, #tpu.memory_space<vmem>>, %arg9: memref<8x1xi32, #tpu.memory_space<vmem>>, %arg10: memref<8x512xf32, #tpu.memory_space<vmem>>, %arg11: memref<8x128xf32, #tpu.memory_space<vmem>>, %arg12: memref<8x16xbf16, #tpu.memory_space<vmem>>, %arg13: memref<8x8xf32, #tpu.memory_space<vmem>>) attributes {dimension_semantics = [#tpu.dimension_semantics<parallel>, #tpu.dimension_semantics<arbitrary>], iteration_bounds = array<i64: 1, 1>, scalar_prefetch = 0 : i64, scratch_operands = 2 : i64, tpu.core_type = #tpu.core_type<tc>, window_params = [{transform_indices = @transform_0, window_bounds = array<i64: 8, 32>}, {pipeline_mode = #tpu.pipeline_mode<synchronous>, transform_indices = @transform_1, window_bounds = array<i64: 32, 16>}, {pipeline_mode = #tpu.pipeline_mode<synchronous>, transform_indices = @transform_2, window_bounds = array<i64: 1, 16>}, {pipeline_mode = #tpu.pipeline_mode<synchronous>, transform_indices = @transform_3, window_bounds = array<i64: 1, 16>}, {pipeline_mode = #tpu.pipeline_mode<synchronous>, transform_indices = @transform_4, window_bounds = array<i64: 1, 16>}, {transform_indices = @transform_5, window_bounds = array<i64: 16, 512>}, {transform_indices = @transform_6, window_bounds = array<i64: 1, 512>}, {transform_indices = @transform_7, window_bounds = array<i64: 8, 1>}, {transform_indices = @transform_8, window_bounds = array<i64: 8, 512>}, {transform_indices = @transform_9, window_bounds = array<i64: 8, 128>}]} {
    %c0_i32 = arith.constant 0 : i32
    %0 = arith.cmpi eq, %arg1, %c0_i32 : i32
    %1 = arith.extui %0 : i1 to i32
    %cst = arith.constant -1.000000e+30 : f32
    %c0_i32_0 = arith.constant 0 : i32
    %2 = arith.cmpi ne, %1, %c0_i32_0 : i32
    scf.if %2 {
      %c0_33 = arith.constant 0 : index
      %c0_34 = arith.constant 0 : index
      %118 = vector.load %arg2[%c0_33, %c0_34] : memref<8x32xf32, #tpu.memory_space<vmem>>, vector<8x32xf32>
      %c0_35 = arith.constant 0 : index
      %c0_36 = arith.constant 0 : index
      %119 = vector.load %arg3[%c0_35, %c0_36] : memref<32x16xf32, #tpu.memory_space<vmem>>, vector<32x16xf32>
      %cst_37 = arith.constant dense<0.000000e+00> : vector<8x16xf32>
      %120 = tpu.matmul %118, %119, %cst_37 {dimension_numbers = #tpu.dot_dimension_numbers<[1], [0], [0], [1], [0, 0, 1, 1], [], []>} : vector<8x32xf32>, vector<32x16xf32>, vector<8x16xf32> -> vector<8x16xf32>
      %c0_38 = arith.constant 0 : index
      %c0_39 = arith.constant 0 : index
      %121 = vector.load %arg4[%c0_38, %c0_39] : memref<1x16xf32, #tpu.memory_space<vmem>>, vector<1x16xf32>
      %122 = vector.broadcast %121 : vector<1x16xf32> to vector<8x16xf32>
      %123 = arith.addf %120, %122 : vector<8x16xf32>
      %cst_40 = arith.constant 5.000000e-01 : f32
      %124 = vector.broadcast %cst_40 : f32 to vector<8x16xf32>
      %125 = arith.mulf %124, %123 : vector<8x16xf32>
      %cst_41 = arith.constant 4.471500e-02 : f32
      %126 = vector.broadcast %cst_41 : f32 to vector<8x16xf32>
      %127 = arith.mulf %126, %123 : vector<8x16xf32>
      %128 = arith.mulf %127, %123 : vector<8x16xf32>
      %129 = arith.mulf %128, %123 : vector<8x16xf32>
      %130 = arith.addf %123, %129 : vector<8x16xf32>
      %cst_42 = arith.constant 0.797884583 : f32
      %131 = vector.broadcast %cst_42 : f32 to vector<8x16xf32>
      %132 = arith.mulf %131, %130 : vector<8x16xf32>
      %133 = math.tanh %132 : vector<8x16xf32>
      %cst_43 = arith.constant 1.000000e+00 : f32
      %134 = vector.broadcast %cst_43 : f32 to vector<8x16xf32>
      %135 = arith.addf %134, %133 : vector<8x16xf32>
      %136 = arith.mulf %125, %135 : vector<8x16xf32>
      %cst_44 = arith.constant dense<0.000000e+00> : vector<8xf32>
      %137 = vector.multi_reduction <add>, %136, %cst_44 [1] : vector<8x16xf32> to vector<8xf32>
      %138 = vector.shape_cast %137 : vector<8xf32> to vector<8x1xf32>
      %cst_45 = arith.constant 1.600000e+01 : f32
      %139 = vector.broadcast %cst_45 : f32 to vector<8x1xf32>
      %140 = arith.divf %138, %139 : vector<8x1xf32>
      %141 = vector.broadcast %140 : vector<8x1xf32> to vector<8x16xf32>
      %142 = arith.subf %136, %141 : vector<8x16xf32>
      %143 = arith.mulf %142, %142 : vector<8x16xf32>
      %cst_46 = arith.constant dense<0.000000e+00> : vector<8xf32>
      %144 = vector.multi_reduction <add>, %143, %cst_46 [1] : vector<8x16xf32> to vector<8xf32>
      %145 = vector.shape_cast %144 : vector<8xf32> to vector<8x1xf32>
      %cst_47 = arith.constant 1.600000e+01 : f32
      %146 = vector.broadcast %cst_47 : f32 to vector<8x1xf32>
      %147 = arith.divf %145, %146 : vector<8x1xf32>
      %148 = vector.broadcast %140 : vector<8x1xf32> to vector<8x16xf32>
      %149 = arith.subf %136, %148 : vector<8x16xf32>
      %cst_48 = arith.constant 9.99999974E-6 : f32
      %150 = vector.broadcast %cst_48 : f32 to vector<8x1xf32>
      %151 = arith.addf %147, %150 : vector<8x1xf32>
      %152 = math.rsqrt %151 : vector<8x1xf32>
      %153 = vector.broadcast %152 : vector<8x1xf32> to vector<8x16xf32>
      %154 = arith.mulf %149, %153 : vector<8x16xf32>
      %c0_49 = arith.constant 0 : index
      %c0_50 = arith.constant 0 : index
      %155 = vector.load %arg5[%c0_49, %c0_50] : memref<1x16xf32, #tpu.memory_space<vmem>>, vector<1x16xf32>
      %156 = vector.broadcast %155 : vector<1x16xf32> to vector<8x16xf32>
      %157 = arith.mulf %154, %156 : vector<8x16xf32>
      %c0_51 = arith.constant 0 : index
      %c0_52 = arith.constant 0 : index
      %158 = vector.load %arg6[%c0_51, %c0_52] : memref<1x16xf32, #tpu.memory_space<vmem>>, vector<1x16xf32>
      %159 = vector.broadcast %158 : vector<1x16xf32> to vector<8x16xf32>
      %160 = arith.addf %157, %159 : vector<8x16xf32>
      %161 = arith.truncf %160 : vector<8x16xf32> to vector<8x16xbf16>
      %c0_53 = arith.constant 0 : index
      %c0_54 = arith.constant 0 : index
      %162 = vector.load %arg12[%c0_53, %c0_54] : memref<8x16xbf16, #tpu.memory_space<vmem>>, vector<8x16xbf16>
      tpu.vector_store %arg12[%c0_53, %c0_54], %161 {strides = array<i32>} : memref<8x16xbf16, #tpu.memory_space<vmem>>, vector<8x16xbf16>,
      %163 = tpu.iota {dimensions = array<i32: 1>} : vector<8x8xi32>
      %c0_i32_55 = arith.constant 0 : i32
      %164 = vector.broadcast %c0_i32_55 : i32 to vector<8x8xi32>
      %165 = arith.cmpi eq, %163, %164 : vector<8x8xi32>
      %c3_i32_56 = arith.constant 3 : i32
      %166 = vector.broadcast %c3_i32_56 : i32 to vector<8x8xi32>
      %167 = arith.cmpi eq, %163, %166 : vector<8x8xi32>
      %168 = arith.ori %165, %167 : vector<8x8xi1>
      %c5_i32_57 = arith.constant 5 : i32
      %169 = vector.broadcast %c5_i32_57 : i32 to vector<8x8xi32>
      %170 = arith.cmpi eq, %163, %169 : vector<8x8xi32>
      %171 = arith.ori %168, %170 : vector<8x8xi1>
      %cst_58 = arith.constant 0.000000e+00 : f32
      %172 = vector.broadcast %cst : f32 to vector<8x8xf32>
      %173 = vector.broadcast %cst_58 : f32 to vector<8x8xf32>
      %174 = arith.select %171, %172, %173 : vector<8x8xi1>, vector<8x8xf32>
      %c0_59 = arith.constant 0 : index
      %c0_60 = arith.constant 0 : index
      %175 = vector.load %arg13[%c0_59, %c0_60] : memref<8x8xf32, #tpu.memory_space<vmem>>, vector<8x8xf32>
      tpu.vector_store %arg13[%c0_59, %c0_60], %174 {strides = array<i32>} : memref<8x8xf32, #tpu.memory_space<vmem>>, vector<8x8xf32>,
    } else {
    }
    %c0 = arith.constant 0 : index
    %c0_1 = arith.constant 0 : index
    %3 = vector.load %arg13[%c0, %c0_1] : memref<8x8xf32, #tpu.memory_space<vmem>>, vector<8x8xf32>
    %4 = vector.extract_strided_slice %3 {offsets = [0, 0], sizes = [8, 1], strides = [1, 1]} : vector<8x8xf32> to vector<8x1xf32>
    %5 = vector.extract_strided_slice %3 {offsets = [0, 1], sizes = [8, 1], strides = [1, 1]} : vector<8x8xf32> to vector<8x1xf32>
    %6 = vector.extract_strided_slice %3 {offsets = [0, 2], sizes = [8, 1], strides = [1, 1]} : vector<8x8xf32> to vector<8x1xf32>
    %7 = vector.extract_strided_slice %3 {offsets = [0, 3], sizes = [8, 1], strides = [1, 1]} : vector<8x8xf32> to vector<8x1xf32>
    %8 = vector.extract_strided_slice %3 {offsets = [0, 4], sizes = [8, 1], strides = [1, 1]} : vector<8x8xf32> to vector<8x1xf32>
    %9 = vector.extract_strided_slice %3 {offsets = [0, 5], sizes = [8, 1], strides = [1, 1]} : vector<8x8xf32> to vector<8x1xf32>
    %10 = vector.extract_strided_slice %3 {offsets = [0, 6], sizes = [8, 1], strides = [1, 1]} : vector<8x8xf32> to vector<8x1xf32>
    %c0_2 = arith.constant 0 : index
    %c0_3 = arith.constant 0 : index
    %11 = vector.load %arg12[%c0_2, %c0_3] : memref<8x16xbf16, #tpu.memory_space<vmem>>, vector<8x16xbf16>
    %c0_4 = arith.constant 0 : index
    %c0_5 = arith.constant 0 : index
    %12 = vector.load %arg7[%c0_4, %c0_5] : memref<16x512xbf16, #tpu.memory_space<vmem>>, vector<16x512xbf16>
    %cst_6 = arith.constant dense<0.000000e+00> : vector<8x512xf32>
    %13 = tpu.matmul %11, %12, %cst_6 {dimension_numbers = #tpu.dot_dimension_numbers<[1], [0], [0], [1], [0, 0, 1, 1], [], []>} : vector<8x16xbf16>, vector<16x512xbf16>, vector<8x512xf32> -> vector<8x512xf32>
    %c0_7 = arith.constant 0 : index
    %c0_8 = arith.constant 0 : index
    %14 = vector.load %arg8[%c0_7, %c0_8] : memref<1x512xf32, #tpu.memory_space<vmem>>, vector<1x512xf32>
    %15 = vector.broadcast %14 : vector<1x512xf32> to vector<8x512xf32>
    %16 = arith.addf %13, %15 : vector<8x512xf32>
    %17 = tpu.iota {dimensions = array<i32: 1>} : vector<8x512xi32>
    %c512_i32 = arith.constant 512 : i32
    %18 = arith.muli %arg1, %c512_i32 : i32
    %19 = vector.broadcast %18 : i32 to vector<8x512xi32>
    %20 = arith.addi %17, %19 : vector<8x512xi32>
    %21 = arith.sitofp %20 : vector<8x512xi32> to vector<8x512xf32>
    %cst_9 = arith.constant dense<0xFF800000> : vector<8xf32>
    %22 = vector.multi_reduction <maximumf>, %16, %cst_9 [1] : vector<8x512xf32> to vector<8xf32>
    %23 = vector.shape_cast %22 : vector<8xf32> to vector<8x1xf32>
    %24 = arith.maximumf %4, %23 : vector<8x1xf32>
    %25 = arith.subf %4, %24 : vector<8x1xf32>
    %26 = math.exp %25 : vector<8x1xf32>
    %27 = arith.mulf %5, %26 : vector<8x1xf32>
    %28 = vector.broadcast %24 : vector<8x1xf32> to vector<8x512xf32>
    %29 = arith.subf %16, %28 : vector<8x512xf32>
    %30 = math.exp %29 : vector<8x512xf32>
    %cst_10 = arith.constant dense<0.000000e+00> : vector<8xf32>
    %31 = vector.multi_reduction <add>, %30, %cst_10 [1] : vector<8x512xf32> to vector<8xf32>
    %32 = vector.shape_cast %31 : vector<8xf32> to vector<8x1xf32>
    %33 = arith.addf %27, %32 : vector<8x1xf32>
    %c0_11 = arith.constant 0 : index
    %c0_12 = arith.constant 0 : index
    %34 = vector.load %arg9[%c0_11, %c0_12] : memref<8x1xi32, #tpu.memory_space<vmem>>, vector<8x1xi32>
    %35 = vector.broadcast %34 : vector<8x1xi32> to vector<8x512xi32>
    %36 = arith.cmpi eq, %20, %35 : vector<8x512xi32>
    %37 = arith.extui %36 : vector<8x512xi1> to vector<8x512xi32>
    %38 = arith.sitofp %37 : vector<8x512xi32> to vector<8x512xf32>
    %39 = arith.mulf %16, %38 : vector<8x512xf32>
    %cst_13 = arith.constant dense<0.000000e+00> : vector<8xf32>
    %40 = vector.multi_reduction <add>, %39, %cst_13 [1] : vector<8x512xf32> to vector<8xf32>
    %41 = vector.shape_cast %40 : vector<8xf32> to vector<8x1xf32>
    %42 = arith.addf %6, %41 : vector<8x1xf32>
    %43 = vector.broadcast %23 : vector<8x1xf32> to vector<8x512xf32>
    %44 = arith.cmpf oeq, %16, %43 : vector<8x512xf32>
    %cst_14 = arith.constant 1.07374182E+9 : f32
    %45 = vector.broadcast %cst_14 : f32 to vector<8x512xf32>
    %46 = arith.select %44, %21, %45 : vector<8x512xi1>, vector<8x512xf32>
    %cst_15 = arith.constant dense<0x7F800000> : vector<8xf32>
    %47 = vector.multi_reduction <minimumf>, %46, %cst_15 [1] : vector<8x512xf32> to vector<8xf32>
    %48 = vector.shape_cast %47 : vector<8xf32> to vector<8x1xf32>
    %49 = arith.cmpf ogt, %23, %7 : vector<8x1xf32>
    %50 = arith.select %49, %48, %8 : vector<8x1xi1>, vector<8x1xf32>
    %51 = arith.maximumf %7, %23 : vector<8x1xf32>
    %c0_16 = arith.constant 0 : index
    %c0_17 = arith.constant 0 : index
    %52 = vector.load %arg10[%c0_16, %c0_17] : memref<8x512xf32, #tpu.memory_space<vmem>>, vector<8x512xf32>
    %53 = arith.addf %16, %52 : vector<8x512xf32>
    %cst_18 = arith.constant dense<0xFF800000> : vector<8xf32>
    %54 = vector.multi_reduction <maximumf>, %53, %cst_18 [1] : vector<8x512xf32> to vector<8xf32>
    %55 = vector.shape_cast %54 : vector<8xf32> to vector<8x1xf32>
    %56 = vector.broadcast %55 : vector<8x1xf32> to vector<8x512xf32>
    %57 = arith.cmpf oeq, %53, %56 : vector<8x512xf32>
    %cst_19 = arith.constant 1.07374182E+9 : f32
    %58 = vector.broadcast %cst_19 : f32 to vector<8x512xf32>
    %59 = arith.select %57, %21, %58 : vector<8x512xi1>, vector<8x512xf32>
    %cst_20 = arith.constant dense<0x7F800000> : vector<8xf32>
    %60 = vector.multi_reduction <minimumf>, %59, %cst_20 [1] : vector<8x512xf32> to vector<8xf32>
    %61 = vector.shape_cast %60 : vector<8xf32> to vector<8x1xf32>
    %62 = arith.cmpf ogt, %55, %9 : vector<8x1xf32>
    %63 = arith.select %62, %61, %10 : vector<8x1xi1>, vector<8x1xf32>
    %64 = arith.maximumf %9, %55 : vector<8x1xf32>
    %65 = tpu.iota {dimensions = array<i32: 1>} : vector<8x8xi32>
    %c0_i32_21 = arith.constant 0 : i32
    %66 = vector.broadcast %c0_i32_21 : i32 to vector<8x8xi32>
    %67 = arith.cmpi eq, %65, %66 : vector<8x8xi32>
    %cst_22 = arith.constant 0.000000e+00 : f32
    %68 = vector.shape_cast %24 : vector<8x1xf32> to vector<8x1xf32>
    %69 = vector.broadcast %68 : vector<8x1xf32> to vector<8x8xf32>
    %70 = vector.broadcast %cst_22 : f32 to vector<8x8xf32>
    %71 = arith.select %67, %69, %70 : vector<8x8xi1>, vector<8x8xf32>
    %c1_i32 = arith.constant 1 : i32
    %72 = vector.broadcast %c1_i32 : i32 to vector<8x8xi32>
    %73 = arith.cmpi eq, %65, %72 : vector<8x8xi32>
    %cst_23 = arith.constant 0.000000e+00 : f32
    %74 = vector.shape_cast %33 : vector<8x1xf32> to vector<8x1xf32>
    %75 = vector.broadcast %74 : vector<8x1xf32> to vector<8x8xf32>
    %76 = vector.broadcast %cst_23 : f32 to vector<8x8xf32>
    %77 = arith.select %73, %75, %76 : vector<8x8xi1>, vector<8x8xf32>
    %78 = arith.addf %71, %77 : vector<8x8xf32>
    %c2_i32 = arith.constant 2 : i32
    %79 = vector.broadcast %c2_i32 : i32 to vector<8x8xi32>
    %80 = arith.cmpi eq, %65, %79 : vector<8x8xi32>
    %cst_24 = arith.constant 0.000000e+00 : f32
    %81 = vector.shape_cast %42 : vector<8x1xf32> to vector<8x1xf32>
    %82 = vector.broadcast %81 : vector<8x1xf32> to vector<8x8xf32>
    %83 = vector.broadcast %cst_24 : f32 to vector<8x8xf32>
    %84 = arith.select %80, %82, %83 : vector<8x8xi1>, vector<8x8xf32>
    %85 = arith.addf %78, %84 : vector<8x8xf32>
    %c3_i32 = arith.constant 3 : i32
    %86 = vector.broadcast %c3_i32 : i32 to vector<8x8xi32>
    %87 = arith.cmpi eq, %65, %86 : vector<8x8xi32>
    %cst_25 = arith.constant 0.000000e+00 : f32
    %88 = vector.shape_cast %51 : vector<8x1xf32> to vector<8x1xf32>
    %89 = vector.broadcast %88 : vector<8x1xf32> to vector<8x8xf32>
    %90 = vector.broadcast %cst_25 : f32 to vector<8x8xf32>
    %91 = arith.select %87, %89, %90 : vector<8x8xi1>, vector<8x8xf32>
    %92 = arith.addf %85, %91 : vector<8x8xf32>
    %c4_i32 = arith.constant 4 : i32
    %93 = vector.broadcast %c4_i32 : i32 to vector<8x8xi32>
    %94 = arith.cmpi eq, %65, %93 : vector<8x8xi32>
    %cst_26 = arith.constant 0.000000e+00 : f32
    %95 = vector.shape_cast %50 : vector<8x1xf32> to vector<8x1xf32>
    %96 = vector.broadcast %95 : vector<8x1xf32> to vector<8x8xf32>
    %97 = vector.broadcast %cst_26 : f32 to vector<8x8xf32>
    %98 = arith.select %94, %96, %97 : vector<8x8xi1>, vector<8x8xf32>
    %99 = arith.addf %92, %98 : vector<8x8xf32>
    %c5_i32 = arith.constant 5 : i32
    %100 = vector.broadcast %c5_i32 : i32 to vector<8x8xi32>
    %101 = arith.cmpi eq, %65, %100 : vector<8x8xi32>
    %cst_27 = arith.constant 0.000000e+00 : f32
    %102 = vector.shape_cast %64 : vector<8x1xf32> to vector<8x1xf32>
    %103 = vector.broadcast %102 : vector<8x1xf32> to vector<8x8xf32>
    %104 = vector.broadcast %cst_27 : f32 to vector<8x8xf32>
    %105 = arith.select %101, %103, %104 : vector<8x8xi1>, vector<8x8xf32>
    %106 = arith.addf %99, %105 : vector<8x8xf32>
    %c6_i32 = arith.constant 6 : i32
    %107 = vector.broadcast %c6_i32 : i32 to vector<8x8xi32>
    %108 = arith.cmpi eq, %65, %107 : vector<8x8xi32>
    %cst_28 = arith.constant 0.000000e+00 : f32
    %109 = vector.shape_cast %63 : vector<8x1xf32> to vector<8x1xf32>
    %110 = vector.broadcast %109 : vector<8x1xf32> to vector<8x8xf32>
    %111 = vector.broadcast %cst_28 : f32 to vector<8x8xf32>
    %112 = arith.select %108, %110, %111 : vector<8x8xi1>, vector<8x8xf32>
    %113 = arith.addf %106, %112 : vector<8x8xf32>
    %c0_29 = arith.constant 0 : index
    %c0_30 = arith.constant 0 : index
    %114 = vector.load %arg13[%c0_29, %c0_30] : memref<8x8xf32, #tpu.memory_space<vmem>>, vector<8x8xf32>
    tpu.vector_store %arg13[%c0_29, %c0_30], %113 {strides = array<i32>} : memref<8x8xf32, #tpu.memory_space<vmem>>, vector<8x8xf32>,
    %c0_i32_31 = arith.constant 0 : i32
    %115 = arith.cmpi eq, %arg1, %c0_i32_31 : i32
    %116 = arith.extui %115 : i1 to i32
    %c0_i32_32 = arith.constant 0 : i32
    %117 = arith.cmpi ne, %116, %c0_i32_32 : i32
    scf.if %117 {
      %118 = math.log %33 : vector<8x1xf32>
      %119 = arith.addf %24, %118 : vector<8x1xf32>
      %120 = arith.subf %119, %42 : vector<8x1xf32>
      %121 = tpu.iota {dimensions = array<i32: 1>} : vector<8x128xi32>
      %c0_i32_33 = arith.constant 0 : i32
      %122 = vector.broadcast %c0_i32_33 : i32 to vector<8x128xi32>
      %123 = arith.cmpi eq, %121, %122 : vector<8x128xi32>
      %cst_34 = arith.constant 0.000000e+00 : f32
      %124 = vector.shape_cast %120 : vector<8x1xf32> to vector<8x1xf32>
      %125 = vector.broadcast %124 : vector<8x1xf32> to vector<8x128xf32>
      %126 = vector.broadcast %cst_34 : f32 to vector<8x128xf32>
      %127 = arith.select %123, %125, %126 : vector<8x128xi1>, vector<8x128xf32>
      %c1_i32_35 = arith.constant 1 : i32
      %128 = vector.broadcast %c1_i32_35 : i32 to vector<8x128xi32>
      %129 = arith.cmpi eq, %121, %128 : vector<8x128xi32>
      %cst_36 = arith.constant 0.000000e+00 : f32
      %130 = vector.shape_cast %50 : vector<8x1xf32> to vector<8x1xf32>
      %131 = vector.broadcast %130 : vector<8x1xf32> to vector<8x128xf32>
      %132 = vector.broadcast %cst_36 : f32 to vector<8x128xf32>
      %133 = arith.select %129, %131, %132 : vector<8x128xi1>, vector<8x128xf32>
      %134 = arith.addf %127, %133 : vector<8x128xf32>
      %c2_i32_37 = arith.constant 2 : i32
      %135 = vector.broadcast %c2_i32_37 : i32 to vector<8x128xi32>
      %136 = arith.cmpi eq, %121, %135 : vector<8x128xi32>
      %cst_38 = arith.constant 0.000000e+00 : f32
      %137 = vector.shape_cast %63 : vector<8x1xf32> to vector<8x1xf32>
      %138 = vector.broadcast %137 : vector<8x1xf32> to vector<8x128xf32>
      %139 = vector.broadcast %cst_38 : f32 to vector<8x128xf32>
      %140 = arith.select %136, %138, %139 : vector<8x128xi1>, vector<8x128xf32>
      %141 = arith.addf %134, %140 : vector<8x128xf32>
      %c0_39 = arith.constant 0 : index
      %c0_40 = arith.constant 0 : index
      %142 = vector.load %arg11[%c0_39, %c0_40] : memref<8x128xf32, #tpu.memory_space<vmem>>, vector<8x128xf32>
      tpu.vector_store %arg11[%c0_39, %c0_40], %141 {strides = array<i32>} : memref<8x128xf32, #tpu.memory_space<vmem>>, vector<8x128xf32>,
    } else {
    }
    return
  }
  func.func @transform_0(%arg0: i32, %arg1: i32) -> (i32, i32) {
    %c0_i32 = arith.constant 0 : i32
    %c0_i32_0 = arith.constant 0 : i32
    return %arg0, %c0_i32 : i32, i32
  }
  func.func @transform_1(%arg0: i32, %arg1: i32) -> (i32, i32) {
    %c0_i32 = arith.constant 0 : i32
    %c0_i32_0 = arith.constant 0 : i32
    %c0_i32_1 = arith.constant 0 : i32
    return %c0_i32, %c0_i32_0 : i32, i32
  }
  func.func @transform_2(%arg0: i32, %arg1: i32) -> (i32, i32) {
    %c0_i32 = arith.constant 0 : i32
    %c0_i32_0 = arith.constant 0 : i32
    %c0_i32_1 = arith.constant 0 : i32
    return %c0_i32, %c0_i32_0 : i32, i32
  }
  func.func @transform_3(%arg0: i32, %arg1: i32) -> (i32, i32) {
    %c0_i32 = arith.constant 0 : i32
    %c0_i32_0 = arith.constant 0 : i32
    %c0_i32_1 = arith.constant 0 : i32
    return %c0_i32, %c0_i32_0 : i32, i32
  }
  func.func @transform_4(%arg0: i32, %arg1: i32) -> (i32, i32) {
    %c0_i32 = arith.constant 0 : i32
    %c0_i32_0 = arith.constant 0 : i32
    %c0_i32_1 = arith.constant 0 : i32
    return %c0_i32, %c0_i32_0 : i32, i32
  }
  func.func @transform_5(%arg0: i32, %arg1: i32) -> (i32, i32) {
    %c0_i32 = arith.constant 0 : i32
    %c0_i32_0 = arith.constant 0 : i32
    return %c0_i32, %arg1 : i32, i32
  }
  func.func @transform_6(%arg0: i32, %arg1: i32) -> (i32, i32) {
    %c0_i32 = arith.constant 0 : i32
    %c0_i32_0 = arith.constant 0 : i32
    return %c0_i32, %arg1 : i32, i32
  }
  func.func @transform_7(%arg0: i32, %arg1: i32) -> (i32, i32) {
    %c0_i32 = arith.constant 0 : i32
    %c0_i32_0 = arith.constant 0 : i32
    return %arg0, %c0_i32 : i32, i32
  }
  func.func @transform_8(%arg0: i32, %arg1: i32) -> (i32, i32) {
    %c0_i32 = arith.constant 0 : i32
    return %arg0, %arg1 : i32, i32
  }
  func.func @transform_9(%arg0: i32, %arg1: i32) -> (i32, i32) {
    %c0_i32 = arith.constant 0 : i32
    %c0_i32_0 = arith.constant 0 : i32
    return %arg0, %c0_i32 : i32, i32
  }
}

</mosaic_0001>

<bundles_post_ra>
// kernel: tpu_custom_call.1
= control target key start
LH: loop header
LB: loop body
LE: loop exit
PB: predicated region body
PF: predicated region fallthrough
CT: control target
= control target key end

     0   :  { %14 = vsyncpa [#allocation5], 0  ;;  %s1026_s0 = inlined_call_operand.hbm [shape: f32[8,32], index: 0, kind: input, shape index: {}]   ;;  %s1027_s1 = inlined_call_operand.vmem [shape: f32[32,16], index: 1, kind: input, shape index: {}]   ;;  %s1028_s2 = inlined_call_operand.hbm [shape: f32[1,16], index: 2, kind: input, shape index: {}]   ;;  %s1029_s3 = inlined_call_operand.hbm [shape: f32[1,16], index: 3, kind: input, shape index: {}]   ;;  %s1030_s4 = inlined_call_operand.vmem [shape: f32[1,16], index: 4, kind: input, shape index: {}]   ;;  %s1031_s5 = inlined_call_operand.vmem [shape: bf16[16,512], index: 5, kind: input, shape index: {}]   ;;  %s1032_s6 = inlined_call_operand.vmem [shape: f32[1,512], index: 6, kind: input, shape index: {}]   ;;  %s1033_s7 = inlined_call_operand.vmem [shape: s32[8,1], index: 7, kind: input, shape index: {}]   ;;  %s1034_s8 = inlined_call_operand.vmem [shape: f32[8,512], index: 8, kind: input, shape index: {}]   ;;  %s1035_s9 = inlined_call_operand.hbm [shape: f32[8,128], index: 9, kind: output, shape index: {}]  }
   0x1   :  { %15 = vsyncpa [#allocation8], 0 }
   0x2   :  { %16 = vsyncpa [#allocation6], 0  ;;  %s738_s30 = smov [#allocation7]   ;;  %s739_s11 = smov [#allocation4]  }
   0x3   :  { %s35_s10 = sshll.u32 %s738_s30, 4  ;;  %s23_s12 = sshll.u32 %s739_s11, 4  ;;  %s36_s10 = int_to_ptr.vmem [resolvable:$true] %s35_s10  ;;  %s24_s12 = int_to_ptr.vmem [resolvable:$true] %s23_s12 }
   0x4   :  { %s644_s15 = scalar_lea.hbm %s1028_s2, 16 }
   0x5   :  { %p645_p0 = scmp.ne.s32.totalorder %s1028_s2, %s644_s15  ;;  %p648_p1 = scmp.lt.u32.totalorder %s644_s15, %s1028_s2 }
   0x7   :  { %p650_p2 = pnand %p648_p1, %p645_p0 }
   0x9   :  { %653 = shalt.err (!%p650_p2)
}
   0xa   :  { %s654_s20 = scalar_lea.vmem %s36_s10, 16  ;;  %s658_s21 = scalar_lea.vmem %s36_s10, 32 }
   0xb   :  { %p655_p3 = scmp.ne.s32.totalorder %s36_s10, %s654_s20  ;;  %p659_p4 = scmp.lt.s32.totalorder %s36_s10, %s36_s10 }
   0xc   :  { %p660_p5 = scmp.lt.s32.totalorder %s658_s21, %s654_s20 }
   0xe   :  { %p661_p6 = por %p660_p5, %p659_p4 }
  0x10   :  { %p662_p7 = pnand %p661_p6, %p655_p3 }
  0x12   :  { %665 = shalt.err (!%p662_p7)
}
  0x13   :  { %38 = dma.hbm_to_vmem [thread:$0]  %s1028_s2, 16, %s36_s10, [#allocation8]  }
  0x14   :  { %s666_s26 = scalar_lea.hbm %s1026_s0, 128 }
  0x15   :  { %p667_p8 = scmp.ne.s32.totalorder %s1026_s0, %s666_s26  ;;  %p670_p9 = scmp.lt.u32.totalorder %s666_s26, %s1026_s0 }
  0x17   :  { %p672_p10 = pnand %p670_p9, %p667_p8 }
  0x19   :  { %675 = shalt.err (!%p672_p10)
}
  0x1a   :  { %s676_s11 = scalar_lea.vmem %s24_s12, 128  ;;  %p681_p12 = scmp.lt.s32.totalorder %s24_s12, %s24_s12 }
  0x1b   :  { %p677_p11 = scmp.ne.s32.totalorder %s24_s12, %s676_s11  ;;  %p682_p13 = scmp.lt.s32.totalorder %s676_s11, %s676_s11 }
  0x1d   :  { %p683_p0 = por %p682_p13, %p681_p12 }
  0x1f   :  { %p684_p1 = pnand %p683_p0, %p677_p11 }
  0x21   :  { %687 = shalt.err (!%p684_p1)
}
  0x22   :  { %26 = dma.hbm_to_vmem [thread:$0]  %s1026_s0, 128, %s24_s12, [#allocation5]  }
  0x23   :  { %s740_s13 = smov [#allocation9]   ;;  %s688_s17 = scalar_lea.hbm %s1029_s3, 16 }
  0x24   :  { %s45_s14 = sshll.u32 %s740_s13, 4  ;;  %p689_p2 = scmp.ne.s32.totalorder %s1029_s3, %s688_s17  ;;  %s46_s14 = int_to_ptr.vmem [resolvable:$true] %s45_s14 }
  0x25   :  { %p692_p3 = scmp.lt.u32.totalorder %s688_s17, %s1029_s3 }
  0x27   :  { %p694_p4 = pnand %p692_p3, %p689_p2 }
  0x29   :  { %697 = shalt.err (!%p694_p4)
}
  0x2a   :  { %s698_s22 = scalar_lea.vmem %s46_s14, 16  ;;  %s702_s0 = scalar_lea.vmem %s46_s14, 32 }
  0x2b   :  { %p699_p5 = scmp.ne.s32.totalorder %s46_s14, %s698_s22  ;;  %p703_p6 = scmp.lt.s32.totalorder %s46_s14, %s46_s14 }
  0x2c   :  { %p704_p7 = scmp.lt.s32.totalorder %s702_s0, %s698_s22 }
  0x2e   :  { %p705_p8 = por %p704_p7, %p703_p6 }
  0x30   :  { %p706_p9 = pnand %p705_p8, %p699_p5 }
  0x32   :  { %709 = shalt.err (!%p706_p9)
}
  0x33   :  { %48 = dma.hbm_to_vmem [thread:$0]  %s1029_s3, 16, %s46_s14, [#allocation8]  }
  0x34   :  { %732 = dma.done.wait [#allocation5], 128  }
  0x35   :  { %733 = vsyncadd [#allocation5], 4294967168 }
  0x36   :  { %734 = dma.done.wait [#allocation8], 32  }
  0x37   :  { %735 = vsyncadd [#allocation8], 4294967264  ;;  %v741_v0 = vmov 0.0|0.0   ;;  %vm742_vm0 = vmmov 0   ;;  %v743_v1 = vmov 0.0   ;;  %v74_v2 = vld [vmem:[%s1027_s1] sm:$0xff]  ;;  %v202_v45 = vlaneseq }
  0x38   :  { %594 = vmatprep.subr.bf16.mxu0 %v741_v0  ;;  %591 = vmatprep.mubr.msk.f32.mxu0 %vm742_vm0, %v743_v1  ;;  %v75_v3 = vld [vmem:[%s1027_s1 + $0x8] sm:$0xff]  ;;  %v76_v4 = vld [vmem:[%s1027_s1 + $0x10] sm:$0xff]  ;;  %v77_v6 = vld [vmem:[%s1027_s1 + $0x18] sm:$0xff]  ;;  %vm85_vm1 = vcmask 261120   ;;  %vm168_vm2 = vcmask 130048   ;;  %v744_v32 = vmov 0  }
  0x39   :  { %v595_v5 = vpack.c.bf16 %v75_v3, %v74_v2  ;;  %v598_v7 = vpack.c.bf16 %v77_v6, %v76_v4  ;;  %v73_v8 = vld [vmem:[#allocation4] sm:$0xff]  ;;  %v564_v9 = vld [vmem:[#allocation7] ss:$0 sm:$0xff]  ;;  %v622_v28 = vld [vmem:[%s1031_s5 + $0x8] ss:$16 sps:$4 sm:$0xff]   ;;  %296 = vmatprep.mubr.bf16.mxu1 %v744_v32  ;;  %616 = vset.pattern.permute.xlu0 %v744_v32  ;;  %vm200_vm3 = vcmask 125952  }
  0x3a   :  { %v624_v29 = vld [vmem:[%s1031_s5 + $0xc] ss:$16 sps:$4 sm:$0xff]   ;;  %v625_v30 = vld [vmem:[%s1031_s5 + $0x4] ss:$16 sps:$4 sm:$0xff]   ;;  %v627_v31 = vld [vmem:[%s1031_s5] ss:$16 sps:$4 sm:$0xff]   ;;  %615 = vset.pattern.permute.xlu1 %v744_v32 }
  0x3b   :  { %596 = vmatpush3.bf16.msra.mxu0 %v595_v5  ;;  %264 = vmatprep.subr.bf16.mxu1 %v625_v30  ;;  %v398_v33 = vld [vmem:[%s1033_s7] sm:$0xff]  ;;  %v566_v38 = vld [vmem:[#allocation9] ss:$0 sm:$0xff]  ;;  %v221_v46 = vshrl.u32 %v202_v45, 7  ;;  %v446_v2 = vld [vmem:[%s1034_s8 + $0x18] sm:$0xff]  ;;  %vm210_vm9 = vcmask 64512  }
  0x3c   :  { %597 = vmatprep.subr.bf16.mxu0 %v741_v0  ;;  %265 = vmatpush1.bf16.msra.mxu1 %v627_v31  ;;  %v567_v40 = vld [vmem:[%s1030_s4] ss:$0 sm:$0xff]  ;;  %v445_v59 = vld [vmem:[%s1034_s8 + $0x10] sm:$0xff]  ;;  %v444_v0 = vld [vmem:[%s1034_s8 + $0x8] sm:$0xff]  ;;  %s747_s25 = smov 127   ;;  %s749_s26 = smov 126  }
  0x3d   :  { %v222_v47 = vsub.s32 0, %v221_v46  ;;  %v230_v48 = vsub.s32 2, %v221_v46  ;;  %v218_v49 = vld [vmem:[%s1032_s6] sm:$0xf]  ;;  %v226_v50 = vsub.s32 1, %v221_v46  ;;  %v234_v51 = vsub.s32 3, %v221_v46 }
  0x3e   :  { %v443_v58 = vld [vmem:[%s1034_s8] sm:$0xff]  ;;  %s746_s8 = smov 1   ;;  %s752_s27 = smov [#allocation10]  }
  0x3f   :  { %599 = vmatpush3.bf16.msra.mxu0 %v598_v7  ;;  %v223_v52 = vrot.slane %v218_v49, %v222_v47  ;;  %v231_v53 = vrot.slane %v218_v49, %v230_v48  ;;  %v227_v54 = vrot.slane %v218_v49, %v226_v50  ;;  %v235_v55 = vrot.slane %v218_v49, %v234_v51  ;;  %s554_s28 = sshll.u32 %s752_s27, 4  ;;  %s555_s28 = int_to_ptr.vmem [resolvable:$true] %s554_s28 }
  0x40   :  { %305 = vmatprep.subr.bf16.mxu0 %v624_v29  ;;  %v745_v48 = vmov 3   ;;  %s710_s3 = scalar_lea.vmem %s555_s28, 128  ;;  %p715_p11 = scmp.lt.s32.totalorder %s555_s28, %s555_s28 }
  0x41   :  { %p711_p10 = scmp.ne.s32.totalorder %s555_s28, %s710_s3  ;;  %p716_p12 = scmp.lt.s32.totalorder %s710_s3, %s710_s3 }
  0x42   :  { %592 = vmatmul.mubr.msk.f32.vlgmr.msra.gmra.mrb[0].mxu0 %vm85_vm1, %v73_v8 }
  0x43   :  { %306 = vmatpush1.bf16.msra.mxu0 %v622_v28  ;;  %337 = vmatprep.mubr.bf16.mxu0 %v744_v32  ;;  %p717_p13 = por %p716_p12, %p715_p11 }
  0x45   :  { %p718_p0 = pnand %p717_p13, %p711_p10 }
 0x115   :  { %v155_v10 = vpop.f32.mrb[0].mxu0 }
 0x116   :  { %v156_v11 = vadd.f32 %v564_v9, %v155_v10  ;;  %v593_v12 = vpop.f32.mrb[1].mxu0 }
 0x118   :  { %v160_v13 = vmul.f32 0.044715, %v156_v11  ;;  %v159_v19 = vmul.f32 0.5, %v156_v11 }
 0x11a   :  { %v161_v14 = vmul.f32 %v160_v13, %v156_v11 }
 0x11c   :  { %v162_v15 = vmul.f32 %v161_v14, %v156_v11 }
 0x11e   :  { %v163_v16 = vadd.f32 %v162_v15, %v156_v11 }
 0x120   :  { %v164_v17 = vmul.f32 0.7978846, %v163_v16 }
 0x122   :  { %628 = vtanh.f32 %v164_v17 }
 0x12c   :  { %v629_v18 = vpop.eup %628 }
 0x12d   :  { %v166_v20 = vadd.f32 1.0, %v629_v18  ;;  %v909_v18 = vand.u32 127, %v202_v45 }
 0x12f   :  { %v167_v21 = vmul.f32 %v166_v20, %v159_v19  ;;  %vm204_vm4 = vcmp.eq.s32.totalorder %v909_v18, 0  ;;  %vm205_vm5 = vcmp.eq.s32.totalorder %v909_v18, 3  ;;  %vm207_vm7 = vcmp.eq.s32.totalorder %v909_v18, 5 }
 0x130   :  { %vm206_vm6 = vmor %vm204_vm4, %vm205_vm5 }
 0x131   :  { %v169_v22 = vsel %vm168_vm2, %v167_v21, 0.0  ;;  %vm208_vm8 = vmor %vm206_vm6, %vm207_vm7 }
 0x132   :  { %170 = vadd.xlane.f32.xlu0 %v169_v22  ;;  %v209_v20 = vsel %vm208_vm8, -1e+30, %v743_v1  ;;  %v926_v22 = vadd.s32 256, %v909_v18 }
 0x133   :  { %211 = vst.msk [vmem:[#allocation3] sm:$0xff] %vm210_vm9, %v209_v20 }
 0x134   :  { %v359_v28 = vcvt.s32.f32 %v926_v22 }
 0x1bf   :  { %v171_v23 = vpop.xlane.xlu0 %170 }
 0x1c0   :  { %v173_v24 = vmul.f32 0.0625, %v171_v23  ;;  %v929_v23 = vadd.s32 384, %v909_v18 }
 0x1c2   :  { %v174_v25 = vsub.f32 %v167_v21, %v173_v24  ;;  %v923_v21 = vadd.s32 128, %v909_v18  ;;  %v360_v29 = vcvt.s32.f32 %v929_v23 }
 0x1c4   :  { %v175_v26 = vmul.f32 %v174_v25, %v174_v25 }
 0x1c6   :  { %v176_v27 = vsel %vm168_vm2, %v175_v26, 0.0  ;;  %v357_v26 = vcvt.s32.f32 %v909_v18 }
 0x1c7   :  { %177 = vadd.xlane.f32.xlu0 %v176_v27  ;;  %v358_v27 = vcvt.s32.f32 %v923_v21 }
 0x1dd   :  { %400 = vperm.xlu0 %616, %v398_v33  }
 0x254   :  { %v178_v34 = vpop.xlane.xlu0 %177 }
 0x255   :  { %v179_v35 = vmul.f32 0.0625, %v178_v34 }
 0x257   :  { %v180_v36 = vadd.f32 1e-05, %v179_v35 }
 0x259   :  { %630 = vrsqrt.f32 %v180_v36 }
 0x25c   :  { %v931_v24 = vpop.permute.xlu0 %400 }
 0x25d   :  { %vm404_vm6 = vcmp.eq.s32.totalorder %v926_v22, %v931_v24  ;;  %vm405_vm8 = vcmp.eq.s32.totalorder %v929_v23, %v931_v24 }
 0x263   :  { %v631_v37 = vpop.eup %630 }
 0x264   :  { %v182_v39 = vmul.f32 %v631_v37, %v174_v25  ;;  %v933_v25 = vld [vmem:[#allocation3] sm:$0xff] }
 0x266   :  { %v190_v41 = vmul.f32 %v566_v38, %v182_v39 }
 0x268   :  { %v198_v42 = vadd.f32 %v567_v40, %v190_v41 }
 0x26a   :  { %v199_v43 = vpack.c.bf16 %v198_v42, %v198_v42 }
 0x26c   :  { %201 = vst.msk [vmem:[#allocation2] sm:$0xf] %vm200_vm3, %v199_v43  ;;  %vm403_vm3 = vcmp.eq.s32.totalorder %v923_v21, %v931_v24 }
 0x273   :  { %v213_v44 = vld [vmem:[#allocation2] sm:$0xf] }
 0x274   :  { %572 = vmatmul.mubr.msk.bf16.vlgmr.msra.gmra.mrb[0].mxu1 %vm168_vm2, %v213_v44  ;;  %573 = vmatmul.mubr.msk.bf16.vlgmr.msra.gmra.mrb[4].mxu0 %vm168_vm2, %v213_v44  ;;  %vm402_vm2 = vcmp.eq.s32.totalorder %v909_v18, %v931_v24 }
 0x347   :  { %v298_v56 = vpop.f32.mrb[0].mxu1  ;;  %v339_v57 = vpop.f32.mrb[4].mxu0 }
 0x348   :  { %v887_v60 = vadd.f32 %v298_v56, %v223_v52  ;;  %v889_v61 = vadd.f32 %v339_v57, %v231_v53  ;;  %v300_v62 = vpop.f32.mrb[1].mxu1  ;;  %v341_v63 = vpop.f32.mrb[5].mxu0 }
 0x349   :  { %v897_v3 = vadd.f32 %v300_v62, %v227_v54  ;;  %v899_v4 = vadd.f32 %v341_v63, %v235_v55  ;;  %v302_v5 = vpop.f32.mrb[2].mxu1  ;;  %v343_v6 = vpop.f32.mrb[6].mxu0 }
 0x34a   :  { %v303_v7 = vpop.f32.mrb[3].mxu1  ;;  %v344_v8 = vpop.f32.mrb[7].mxu0  ;;  %v447_v9 = vadd.f32 %v443_v58, %v887_v60  ;;  %v449_v10 = vadd.f32 %v445_v59, %v889_v61 }
 0x34b   :  { %v361_v11 = vmax.f32 %v887_v60, %v897_v3  ;;  %v362_v12 = vmax.f32 %v889_v61, %v899_v4  ;;  %v448_v13 = vadd.f32 %v444_v0, %v897_v3  ;;  %v450_v14 = vadd.f32 %v446_v2, %v899_v4 }
 0x34d   :  { %v363_v15 = vmax.f32 %v361_v11, %v362_v12  ;;  %v451_v16 = vmax.f32 %v447_v9, %v448_v13  ;;  %v452_v17 = vmax.f32 %v449_v10, %v450_v14 }
 0x34f   :  { %364 = vmax.xlane.f32.xlu1 %v363_v15  ;;  %v453_v19 = vmax.f32 %v451_v16, %v452_v17  ;;  %v577_v16 = vsel %vm405_vm8, 1.0, %v743_v1 }
 0x351   :  { %454 = vmax.xlane.f32.xlu0 %v453_v19  ;;  %v417_v19 = vmul.f32 %v577_v16, %v899_v4 }
 0x3dc   :  { %v939_v30 = vpop.xlane.xlu1 %364 }
 0x3dd   :  { %v943_v31 = vmax.f32 %v933_v25, %v939_v30  ;;  %vm424_vm10 = vcmp.eq.f32.partialorder %v887_v60, %v939_v30  ;;  %vm425_vm11 = vcmp.eq.f32.partialorder %v897_v3, %v939_v30  ;;  %vm426_vm12 = vcmp.eq.f32.partialorder %v889_v61, %v939_v30 }
 0x3de   :  { %v951_v33 = vpop.xlane.xlu0 %454  ;;  %vm427_vm13 = vcmp.eq.f32.partialorder %v899_v4, %v939_v30  ;;  %v428_v34 = vsel %vm424_vm10, %v357_v26, 1.0737418e+09  ;;  %v429_v35 = vsel %vm425_vm11, %v358_v27, 1.0737418e+09  ;;  %v430_v36 = vsel %vm426_vm12, %v359_v28, 1.0737418e+09 }
 0x3df   :  { %377 = vperm.xlu1 %615, %v943_v31   ;;  %v431_v37 = vsel %vm427_vm13, %v360_v29, 1.0737418e+09  ;;  %v432_v38 = vmin.f32 %v428_v34, %v429_v35  ;;  %vm456_vm14 = vcmp.eq.f32.partialorder %v447_v9, %v951_v33  ;;  %vm457_vm15 = vcmp.eq.f32.partialorder %v448_v13, %v951_v33 }
 0x3e0   :  { %v433_v39 = vmin.f32 %v430_v36, %v431_v37  ;;  %vm458_vm0 = vcmp.eq.f32.partialorder %v449_v10, %v951_v33  ;;  %vm459_vm1 = vcmp.eq.f32.partialorder %v450_v14, %v951_v33  ;;  %v460_v40 = vsel %vm456_vm14, %v357_v26, 1.0737418e+09 }
 0x3e1   :  { %v461_v41 = vsel %vm457_vm15, %v358_v27, 1.0737418e+09  ;;  %v462_v42 = vsel %vm458_vm0, %v359_v28, 1.0737418e+09  ;;  %v463_v44 = vsel %vm459_vm1, %v360_v29, 1.0737418e+09  ;;  %v367_v5 = vsub.f32 %v933_v25, %v943_v31 }
 0x3e2   :  { %v434_v43 = vmin.f32 %v432_v38, %v433_v39  ;;  %v464_v45 = vmin.f32 %v460_v40, %v461_v41  ;;  %v465_v46 = vmin.f32 %v462_v42, %v463_v44  ;;  %v574_v9 = vsel %vm402_vm2, 1.0, %v743_v1 }
 0x3e3   :  { %619 = vset.pattern.permute.xlu1 %v745_v48  ;;  %v368_v7 = vmul.f32 1.442695, %v367_v5  ;;  %v575_v10 = vsel %vm403_vm3, 1.0, %v743_v1  ;;  %v414_v11 = vmul.f32 %v574_v9, %v887_v60  ;;  %v576_v13 = vsel %vm404_vm6, 1.0, %v743_v1 }
 0x3e4   :  { %435 = vmin.xlane.f32.xlu0 %v434_v43  ;;  %v466_v47 = vmin.f32 %v464_v45, %v465_v46  ;;  %v415_v12 = vmul.f32 %v575_v10, %v897_v3  ;;  %v416_v15 = vmul.f32 %v576_v13, %v889_v61  ;;  %vm437_vm10 = vcmp.gt.f32.partialorder %v939_v30, %v933_v25 }
 0x3e5   :  { %v471_v29 = vmax.f32 %v933_v25, %v951_v33  ;;  %v750_v34 = vmov 5   ;;  %v751_v35 = vmov 2   ;;  %vm469_vm11 = vcmp.gt.f32.partialorder %v951_v33, %v933_v25 }
 0x3e6   :  { %v418_v14 = vadd.f32 %v415_v12, %v414_v11  ;;  %vm474_vm12 = vcmp.eq.s32.totalorder %v909_v18, 1  ;;  %vm482_vm13 = vcmp.eq.s32.totalorder %v909_v18, 2  ;;  %vm497_vm14 = vcmp.eq.s32.totalorder %v909_v18, 4 }
 0x3e7   :  { %vm513_vm15 = vcmp.eq.s32.totalorder %v909_v18, 6 }
 0x3e8   :  { %467 = vmin.xlane.f32.xlu0 %v466_v47  ;;  %v419_v17 = vadd.f32 %v418_v14, %v416_v15 }
 0x3ea   :  { %v420_v20 = vadd.f32 %v419_v17, %v417_v19 }
 0x45e   :  { %v960_v49 = vpop.permute.xlu1 %377 }
 0x45f   :  { %v380_v50 = vsub.f32 %v887_v60, %v960_v49  ;;  %v381_v51 = vsub.f32 %v897_v3, %v960_v49  ;;  %v382_v52 = vsub.f32 %v889_v61, %v960_v49  ;;  %v383_v53 = vsub.f32 %v899_v4, %v960_v49 }
 0x460   :  { %v748_v60 = vmov 1  }
 0x461   :  { %v384_v54 = vmul.f32 1.442695, %v380_v50  ;;  %v386_v55 = vmul.f32 1.442695, %v381_v51  ;;  %v388_v56 = vmul.f32 1.442695, %v382_v52  ;;  %617 = vset.pattern.permute.xlu0 %v748_v60 }
 0x462   :  { %v390_v57 = vmul.f32 1.442695, %v383_v53 }
 0x463   :  { %632 = vpow2.f32 %v384_v54 }
 0x464   :  { %634 = vpow2.f32 %v386_v55 }
 0x465   :  { %636 = vpow2.f32 %v388_v56 }
 0x466   :  { %638 = vpow2.f32 %v390_v57 }
 0x467   :  { %640 = vpow2.f32 %v368_v7 }
 0x46d   :  { %v633_v58 = vpop.eup %632 }
 0x46e   :  { %v635_v59 = vpop.eup %634 }
 0x46f   :  { %v392_v62 = vadd.f32 %v635_v59, %v633_v58  ;;  %v637_v63 = vpop.eup %636 }
 0x470   :  { %v639_v2 = vpop.eup %638 }
 0x471   :  { %v393_v0 = vadd.f32 %v637_v63, %v392_v62  ;;  %v641_v8 = vpop.eup %640  ;;  %v436_v26 = vpop.xlane.xlu0 %435 }
 0x473   :  { %v394_v6 = vadd.f32 %v639_v2, %v393_v0 }
 0x475   :  { %395 = vadd.xlane.f32.xlu1 %v394_v6  ;;  %v468_v36 = vpop.xlane.xlu0 %467 }
 0x486   :  { %371 = vrot.lane.b32.xlu1 %v641_v8, %s746_s8 }
 0x4aa   :  { %421 = vadd.xlane.f32.xlu1 %v420_v20 }
 0x4bb   :  { %439 = vrot.lane.b32.xlu1 %v933_v25, %s747_s25 }
 0x4bf   :  { %492 = vperm.xlu1 %619, %v943_v31  }
 0x502   :  { %v396_v3 = vpop.xlane.xlu1 %395 }
 0x506   :  { %v372_v21 = vpop.permute.xlu1 %371 }
 0x507   :  { %v374_v22 = vmul.f32 %v372_v21, %v933_v25 }
 0x509   :  { %v397_v23 = vadd.f32 %v396_v3, %v374_v22 }
 0x50b   :  { %642 = vlog2.f32 %v397_v23 }
 0x515   :  { %v643_v61 = vpop.eup %642 }
 0x516   :  { %v527_v1 = vmul.f32 0.6931472, %v643_v61 }
 0x518   :  { %529 = vrot.lane.b32.xlu0 %v527_v1, %s747_s25 }
 0x537   :  { %v422_v24 = vpop.xlane.xlu1 %421 }
 0x538   :  { %v423_v4 = vadd.f32 %v422_v24, %v933_v25  ;;  %v473_v25 = vsel %vm204_vm4, %v960_v49, 0.0 }
 0x53a   :  { %533 = vrot.lane.b32.xlu0 %v423_v4, %s749_s26 }
 0x53b   :  { %v440_v27 = vpop.permute.xlu1 %439 }
 0x53c   :  { %v442_v28 = vsel %vm437_vm10, %v436_v26, %v440_v27  ;;  %v470_v37 = vsel %vm469_vm11, %v468_v36, %v440_v27 }
 0x53d   :  { %500 = vperm.xlu1 %619, %v442_v28  }
 0x53e   :  { %477 = vperm.xlu0 %617, %v397_v23  }
 0x53f   :  { %v493_v41 = vpop.permute.xlu1 %492 }
 0x540   :  { %v495_v48 = vsel %vm205_vm5, %v493_v41, 0.0 }
 0x541   :  { %621 = vset.pattern.permute.xlu1 %v750_v34 }
 0x542   :  { %618 = vset.pattern.permute.xlu0 %v751_v35  ;;  %508 = vperm.xlu1 %621, %v471_v29  }
 0x543   :  { %485 = vperm.xlu0 %618, %v423_v4  }
 0x546   :  { %516 = vperm.xlu1 %621, %v470_v37  }
 0x547   :  { %620 = vset.pattern.permute.xlu0 %v744_v32 }
 0x58a   :  { %v530_v30 = vpop.permute.xlu0 %529 }
 0x58b   :  { %v532_v38 = vadd.f32 %v530_v30, %v943_v31 }
 0x5ac   :  { %v534_v39 = vpop.permute.xlu0 %533 }
 0x5ad   :  { %v536_v40 = vsub.f32 %v532_v38, %v534_v39 }
 0x5af   :  { %539 = vperm.xlu0 %620, %v536_v40  }
 0x5bc   :  { %v501_v42 = vpop.permute.xlu1 %500 }
 0x5bd   :  { %v478_v43 = vpop.permute.xlu0 %477  ;;  %v543_v44 = vsel %vm474_vm12, %v501_v42, 0.0  ;;  %v503_v53 = vsel %vm497_vm14, %v501_v42, 0.0 }
 0x5be   :  { %v480_v45 = vsel %vm474_vm12, %v478_v43, 0.0 }
 0x5bf   :  { %v481_v33 = vadd.f32 %v480_v45, %v473_v25 }
 0x5c1   :  { %v509_v32 = vpop.permute.xlu1 %508 }
 0x5c2   :  { %v486_v46 = vpop.permute.xlu0 %485  ;;  %v511_v49 = vsel %vm207_vm7, %v509_v32, 0.0 }
 0x5c3   :  { %v488_v31 = vsel %vm482_vm13, %v486_v46, 0.0 }
 0x5c4   :  { %v489_v47 = vadd.f32 %v488_v31, %v481_v33 }
 0x5c5   :  { %v517_v50 = vpop.permute.xlu1 %516 }
 0x5c6   :  { %v496_v51 = vadd.f32 %v495_v48, %v489_v47  ;;  %v545_v52 = vsel %vm482_vm13, %v517_v50, 0.0  ;;  %v519_v56 = vsel %vm513_vm15, %v517_v50, 0.0 }
 0x5c8   :  { %v504_v54 = vadd.f32 %v503_v53, %v496_v51 }
 0x5ca   :  { %v512_v55 = vadd.f32 %v511_v49, %v504_v54 }
 0x5cc   :  { %v520_v57 = vadd.f32 %v519_v56, %v512_v55 }
 0x5ce   :  { %522 = vst.msk [vmem:[#allocation3] sm:$0xff] %vm210_vm9, %v520_v57 }
 0x62e   :  { %v540_v58 = vpop.permute.xlu0 %539 }
 0x62f   :  { %v542_v59 = vsel %vm204_vm4, %v540_v58, 0.0 }
 0x630   :  { %v544_v62 = vadd.f32 %v543_v44, %v542_v59 }
 0x632   :  { %v546_v63 = vadd.f32 %v545_v52, %v544_v62 }
 0x634   :  { %547 = vst [vmem:[#allocation10] sm:$0xff] %v546_v63 }
 0x635   :  { %721 = shalt.err (!%p718_p0)
}
 0x636   :  { %s722_s1 = scalar_lea.hbm %s1035_s9, 128 }
 0x637   :  { %p723_p1 = scmp.ne.s32.totalorder %s1035_s9, %s722_s1  ;;  %p726_p2 = scmp.lt.u32.totalorder %s722_s1, %s1035_s9 }
 0x639   :  { %p728_p3 = pnand %p726_p2, %p723_p1 }
 0x63b   :  { %731 = shalt.err (!%p728_p3)
}
 0x63c   :  { %557 = dma.vmem_to_hbm [thread:$0]  %s555_s28, 128, %s1035_s9, [#allocation6]  }
 0x63d   :  { %736 = dma.done.wait [#allocation6], 128  }
 0x63e   :  { %737 = vsyncadd [#allocation6], 4294967168 }
 0x63f   :  { %561 = vsyncpa [#allocation5], 1 }
 0x640   :  { %562 = vsyncpa [#allocation8], 1 }
 0x641   :  { %563 = vsyncpa [#allocation6], 1 }

</bundles_post_ra>
